<compile_context>
chip_gen: v7x
topology: tpu7x:2x2x1
jax: 0.10.0
libtpu: 0.0.40
codegen_flags: <defaults>
</compile_context>

<pallas_src>
import jax
import jax.numpy as jnp
from jax.experimental import pallas as pl
from jax.experimental.pallas import tpu as pltpu


def _round_up(x, m):
    return ((x + m - 1) // m) * m


def process_model_kernel(s_ref, a_ref,
                         w1_ref, b1_ref, w2_ref, b2_ref, w3_ref, b3_ref,
                         wa1_ref, ba1_ref, wa2_ref, ba2_ref, wa3_ref, ba3_ref,
                         w4x_ref, w4y_ref, b4_ref, w5_ref, b5_ref,
                         o_ref):
    f32 = jnp.float32
    s = s_ref[...]                                   # [T, dim_x]
    a = a_ref[...]                                   # [T, dim_a]

    # state branch: dim_x -> 64 -> 128 -> 64
    x = jnp.maximum(jnp.dot(s, w1_ref[...], preferred_element_type=f32) + b1_ref[...], 0.0)
    x = jnp.maximum(jnp.dot(x, w2_ref[...], preferred_element_type=f32) + b2_ref[...], 0.0)
    x = jnp.maximum(jnp.dot(x, w3_ref[...], preferred_element_type=f32) + b3_ref[...], 0.0)

    # action branch: dim_a -> 64 -> 128 -> 64
    y = jnp.maximum(jnp.dot(a, wa1_ref[...], preferred_element_type=f32) + ba1_ref[...], 0.0)
    y = jnp.maximum(jnp.dot(y, wa2_ref[...], preferred_element_type=f32) + ba2_ref[...], 0.0)
    y = jnp.maximum(jnp.dot(y, wa3_ref[...], preferred_element_type=f32) + ba3_ref[...], 0.0)

    # merge: concat(x, y) @ W4  ==  x @ W4[:64] + y @ W4[64:]   (concat folded on host)
    m = (jnp.dot(x, w4x_ref[...], preferred_element_type=f32)
         + jnp.dot(y, w4y_ref[...], preferred_element_type=f32)
         + b4_ref[...])

    upd = jnp.dot(m, w5_ref[...], preferred_element_type=f32) + b5_ref[...]
    o_ref[...] = s + upd


def process_model_action(last_state, action, params, *, tile_n=256):
    """last_state: [B, K, dim_x], action: [B, K, dim_a] -> [B, K, dim_x] float32."""
    (w1, b1, w2, b2, w3, b3,
     wa1, ba1, wa2, ba2, wa3, ba3,
     w4, b4, w5, b5) = params

    B, K, dim_x = last_state.shape
    dim_a = action.shape[-1]
    N = B * K

    s2 = last_state.reshape(N, dim_x).astype(jnp.float32)
    a2 = action.reshape(N, dim_a).astype(jnp.float32)

    # Split the merge-layer weight so the kernel never concatenates along lanes.
    w4x = w4[:64, :]
    w4y = w4[64:, :]

    # Tile over N; pad to a multiple of the (sublane-aligned) tile.
    T = min(tile_n, _round_up(N, 8))
    N_pad = _round_up(N, T)
    if N_pad != N:
        s2 = jnp.pad(s2, ((0, N_pad - N), (0, 0)))
        a2 = jnp.pad(a2, ((0, N_pad - N), (0, 0)))
    n_tiles = N_pad // T

    def row_spec(dim):
        return pl.BlockSpec((T, dim), lambda i: (i, 0))

    def const_spec(r, c):
        return pl.BlockSpec((r, c), lambda i: (0, 0))

    flops = 2 * N_pad * (dim_x * 64 + 64 * 128 + 128 * 64
                         + dim_a * 64 + 64 * 128 + 128 * 64
                         + 128 * 64 + 64 * dim_x)
    weight_elems = (dim_x * 64 + 64 + 64 * 128 + 128 + 128 * 64 + 64
                    + dim_a * 64 + 64 + 64 * 128 + 128 + 128 * 64 + 64
                    + 128 * 64 + 64 + 64 * dim_x + dim_x)
    bytes_accessed = 4 * (N_pad * (dim_x + dim_a + dim_x) + weight_elems)

    out = pl.pallas_call(
        process_model_kernel,
        out_shape=jax.ShapeDtypeStruct((N_pad, dim_x), jnp.float32),
        grid=(n_tiles,),
        in_specs=[
            row_spec(dim_x),            # last_state rows
            row_spec(dim_a),            # action rows
            const_spec(dim_x, 64), const_spec(1, 64),    # w1, b1
            const_spec(64, 128),   const_spec(1, 128),   # w2, b2
            const_spec(128, 64),   const_spec(1, 64),    # w3, b3
            const_spec(dim_a, 64), const_spec(1, 64),    # wa1, ba1
            const_spec(64, 128),   const_spec(1, 128),   # wa2, ba2
            const_spec(128, 64),   const_spec(1, 64),    # wa3, ba3
            const_spec(64, 64),                           # w4 (x half)
            const_spec(64, 64),                           # w4 (y half)
            const_spec(1, 64),                            # b4
            const_spec(64, dim_x), const_spec(1, dim_x),  # w5, b5
        ],
        out_specs=row_spec(dim_x),
        compiler_params=pltpu.CompilerParams(
            dimension_semantics=("parallel",),
            vmem_limit_bytes=32 * 1024 * 1024,
        ),
        cost_estimate=pl.CostEstimate(
            flops=flops, transcendentals=0, bytes_accessed=bytes_accessed),
    )(s2, a2,
      w1, b1, w2, b2, w3, b3,
      wa1, ba1, wa2, ba2, wa3, ba3,
      w4x, w4y, b4, w5, b5)

    return out[:N].reshape(B, K, dim_x)


def process_model_action_ref(last_state, action, params):
    """Pure-JAX reference (deterministic mean path of LinearFlipout)."""
    (w1, b1, w2, b2, w3, b3,
     wa1, ba1, wa2, ba2, wa3, ba3,
     w4, b4, w5, b5) = params
    B, K, dim_x = last_state.shape
    s = last_state.reshape(B * K, dim_x).astype(jnp.float32)
    a = action.reshape(B * K, -1).astype(jnp.float32)

    x = jnp.maximum(s @ w1 + b1, 0.0)
    x = jnp.maximum(x @ w2 + b2, 0.0)
    x = jnp.maximum(x @ w3 + b3, 0.0)
    y = jnp.maximum(a @ wa1 + ba1, 0.0)
    y = jnp.maximum(y @ wa2 + ba2, 0.0)
    y = jnp.maximum(y @ wa3 + ba3, 0.0)
    merge = jnp.concatenate([x, y], axis=1)
    m = merge @ w4 + b4
    upd = m @ w5 + b5
    return (s + upd).reshape(B, K, dim_x)


if __name__ == "__main__":
    batch, num_ensemble, dim_x, dim_a = 2, 8, 8, 4

    key = jax.random.PRNGKey(0)
    keys = jax.random.split(key, 20)

    def lin(kw, kb, fan_in, fan_out):
        w = 0.1 * jax.random.normal(kw, (fan_in, fan_out), dtype=jnp.float32)
        b = 0.01 * jax.random.normal(kb, (1, fan_out), dtype=jnp.float32)
        return w, b

    w1, b1 = lin(keys[0], keys[1], dim_x, 64)
    w2, b2 = lin(keys[2], keys[3], 64, 128)
    w3, b3 = lin(keys[4], keys[5], 128, 64)
    wa1, ba1 = lin(keys[6], keys[7], dim_a, 64)
    wa2, ba2 = lin(keys[8], keys[9], 64, 128)
    wa3, ba3 = lin(keys[10], keys[11], 128, 64)
    w4, b4 = lin(keys[12], keys[13], 128, 64)
    w5, b5 = lin(keys[14], keys[15], 64, dim_x)

    params = (w1, b1, w2, b2, w3, b3,
              wa1, ba1, wa2, ba2, wa3, ba3,
              w4, b4, w5, b5)

    last_state = jax.random.normal(keys[16], (batch, num_ensemble, dim_x), dtype=jnp.float32)
    action = jax.random.normal(keys[17], (batch, num_ensemble, dim_a), dtype=jnp.float32)

    out = process_model_action(last_state, action, params)
    out = jax.block_until_ready(out)

    out_ref = process_model_action_ref(last_state, action, params)
    assert out.shape == (batch, num_ensemble, dim_x)
    assert jnp.allclose(out, out_ref, atol=1e-5, rtol=1e-5)

    print("KERNEL_OK")
</pallas_src>

<mosaic_0001>
module attributes {stable_mosaic.version = 11 : i64} {
  func.func @process_model_kernel(%arg0: i32, %arg1: memref<16x8xf32, #tpu.memory_space<vmem>>, %arg2: memref<16x4xf32, #tpu.memory_space<vmem>>, %arg3: memref<8x64xf32, #tpu.memory_space<vmem>>, %arg4: memref<1x64xf32, #tpu.memory_space<vmem>>, %arg5: memref<64x128xf32, #tpu.memory_space<vmem>>, %arg6: memref<1x128xf32, #tpu.memory_space<vmem>>, %arg7: memref<128x64xf32, #tpu.memory_space<vmem>>, %arg8: memref<1x64xf32, #tpu.memory_space<vmem>>, %arg9: memref<4x64xf32, #tpu.memory_space<vmem>>, %arg10: memref<1x64xf32, #tpu.memory_space<vmem>>, %arg11: memref<64x128xf32, #tpu.memory_space<vmem>>, %arg12: memref<1x128xf32, #tpu.memory_space<vmem>>, %arg13: memref<128x64xf32, #tpu.memory_space<vmem>>, %arg14: memref<1x64xf32, #tpu.memory_space<vmem>>, %arg15: memref<64x64xf32, #tpu.memory_space<vmem>>, %arg16: memref<64x64xf32, #tpu.memory_space<vmem>>, %arg17: memref<1x64xf32, #tpu.memory_space<vmem>>, %arg18: memref<64x8xf32, #tpu.memory_space<vmem>>, %arg19: memref<1x8xf32, #tpu.memory_space<vmem>>, %arg20: memref<16x8xf32, #tpu.memory_space<vmem>>) attributes {dimension_semantics = [#tpu.dimension_semantics<parallel>], iteration_bounds = array<i64: 1>, scalar_prefetch = 0 : i64, scratch_operands = 0 : i64, tpu.core_type = #tpu.core_type<tc>, window_params = [{transform_indices = @transform_0, window_bounds = array<i64: 16, 8>}, {transform_indices = @transform_1, window_bounds = array<i64: 16, 4>}, {pipeline_mode = #tpu.pipeline_mode<synchronous>, transform_indices = @transform_2, window_bounds = array<i64: 8, 64>}, {pipeline_mode = #tpu.pipeline_mode<synchronous>, transform_indices = @transform_3, window_bounds = array<i64: 1, 64>}, {pipeline_mode = #tpu.pipeline_mode<synchronous>, transform_indices = @transform_4, window_bounds = array<i64: 64, 128>}, {pipeline_mode = #tpu.pipeline_mode<synchronous>, transform_indices = @transform_5, window_bounds = array<i64: 1, 128>}, {pipeline_mode = #tpu.pipeline_mode<synchronous>, transform_indices = @transform_6, window_bounds = array<i64: 128, 64>}, {pipeline_mode = #tpu.pipeline_mode<synchronous>, transform_indices = @transform_7, window_bounds = array<i64: 1, 64>}, {pipeline_mode = #tpu.pipeline_mode<synchronous>, transform_indices = @transform_8, window_bounds = array<i64: 4, 64>}, {pipeline_mode = #tpu.pipeline_mode<synchronous>, transform_indices = @transform_9, window_bounds = array<i64: 1, 64>}, {pipeline_mode = #tpu.pipeline_mode<synchronous>, transform_indices = @transform_10, window_bounds = array<i64: 64, 128>}, {pipeline_mode = #tpu.pipeline_mode<synchronous>, transform_indices = @transform_11, window_bounds = array<i64: 1, 128>}, {pipeline_mode = #tpu.pipeline_mode<synchronous>, transform_indices = @transform_12, window_bounds = array<i64: 128, 64>}, {pipeline_mode = #tpu.pipeline_mode<synchronous>, transform_indices = @transform_13, window_bounds = array<i64: 1, 64>}, {pipeline_mode = #tpu.pipeline_mode<synchronous>, transform_indices = @transform_14, window_bounds = array<i64: 64, 64>}, {pipeline_mode = #tpu.pipeline_mode<synchronous>, transform_indices = @transform_15, window_bounds = array<i64: 64, 64>}, {pipeline_mode = #tpu.pipeline_mode<synchronous>, transform_indices = @transform_16, window_bounds = array<i64: 1, 64>}, {pipeline_mode = #tpu.pipeline_mode<synchronous>, transform_indices = @transform_17, window_bounds = array<i64: 64, 8>}, {pipeline_mode = #tpu.pipeline_mode<synchronous>, transform_indices = @transform_18, window_bounds = array<i64: 1, 8>}, {transform_indices = @transform_19, window_bounds = array<i64: 16, 8>}]} {
    %c0 = arith.constant 0 : index
    %c0_0 = arith.constant 0 : index
    %0 = vector.load %arg1[%c0, %c0_0] : memref<16x8xf32, #tpu.memory_space<vmem>>, vector<16x8xf32>
    %c0_1 = arith.constant 0 : index
    %c0_2 = arith.constant 0 : index
    %1 = vector.load %arg2[%c0_1, %c0_2] : memref<16x4xf32, #tpu.memory_space<vmem>>, vector<16x4xf32>
    %c0_3 = arith.constant 0 : index
    %c0_4 = arith.constant 0 : index
    %2 = vector.load %arg3[%c0_3, %c0_4] : memref<8x64xf32, #tpu.memory_space<vmem>>, vector<8x64xf32>
    %cst = arith.constant dense<0.000000e+00> : vector<16x64xf32>
    %3 = tpu.matmul %0, %2, %cst {dimension_numbers = #tpu.dot_dimension_numbers<[1], [0], [0], [1], [0, 0, 1, 1], [], []>} : vector<16x8xf32>, vector<8x64xf32>, vector<16x64xf32> -> vector<16x64xf32>
    %c0_5 = arith.constant 0 : index
    %c0_6 = arith.constant 0 : index
    %4 = vector.load %arg4[%c0_5, %c0_6] : memref<1x64xf32, #tpu.memory_space<vmem>>, vector<1x64xf32>
    %5 = vector.broadcast %4 : vector<1x64xf32> to vector<16x64xf32>
    %6 = arith.addf %3, %5 : vector<16x64xf32>
    %cst_7 = arith.constant 0.000000e+00 : f32
    %7 = vector.broadcast %cst_7 : f32 to vector<16x64xf32>
    %8 = arith.maximumf %6, %7 : vector<16x64xf32>
    %c0_8 = arith.constant 0 : index
    %c0_9 = arith.constant 0 : index
    %9 = vector.load %arg5[%c0_8, %c0_9] : memref<64x128xf32, #tpu.memory_space<vmem>>, vector<64x128xf32>
    %cst_10 = arith.constant dense<0.000000e+00> : vector<16x128xf32>
    %10 = tpu.matmul %8, %9, %cst_10 {dimension_numbers = #tpu.dot_dimension_numbers<[1], [0], [0], [1], [0, 0, 1, 1], [], []>} : vector<16x64xf32>, vector<64x128xf32>, vector<16x128xf32> -> vector<16x128xf32>
    %c0_11 = arith.constant 0 : index
    %c0_12 = arith.constant 0 : index
    %11 = vector.load %arg6[%c0_11, %c0_12] : memref<1x128xf32, #tpu.memory_space<vmem>>, vector<1x128xf32>
    %12 = vector.broadcast %11 : vector<1x128xf32> to vector<16x128xf32>
    %13 = arith.addf %10, %12 : vector<16x128xf32>
    %cst_13 = arith.constant 0.000000e+00 : f32
    %14 = vector.broadcast %cst_13 : f32 to vector<16x128xf32>
    %15 = arith.maximumf %13, %14 : vector<16x128xf32>
    %c0_14 = arith.constant 0 : index
    %c0_15 = arith.constant 0 : index
    %16 = vector.load %arg7[%c0_14, %c0_15] : memref<128x64xf32, #tpu.memory_space<vmem>>, vector<128x64xf32>
    %cst_16 = arith.constant dense<0.000000e+00> : vector<16x64xf32>
    %17 = tpu.matmul %15, %16, %cst_16 {dimension_numbers = #tpu.dot_dimension_numbers<[1], [0], [0], [1], [0, 0, 1, 1], [], []>} : vector<16x128xf32>, vector<128x64xf32>, vector<16x64xf32> -> vector<16x64xf32>
    %c0_17 = arith.constant 0 : index
    %c0_18 = arith.constant 0 : index
    %18 = vector.load %arg8[%c0_17, %c0_18] : memref<1x64xf32, #tpu.memory_space<vmem>>, vector<1x64xf32>
    %19 = vector.broadcast %18 : vector<1x64xf32> to vector<16x64xf32>
    %20 = arith.addf %17, %19 : vector<16x64xf32>
    %cst_19 = arith.constant 0.000000e+00 : f32
    %21 = vector.broadcast %cst_19 : f32 to vector<16x64xf32>
    %22 = arith.maximumf %20, %21 : vector<16x64xf32>
    %c0_20 = arith.constant 0 : index
    %c0_21 = arith.constant 0 : index
    %23 = vector.load %arg9[%c0_20, %c0_21] : memref<4x64xf32, #tpu.memory_space<vmem>>, vector<4x64xf32>
    %cst_22 = arith.constant dense<0.000000e+00> : vector<16x64xf32>
    %24 = tpu.matmul %1, %23, %cst_22 {dimension_numbers = #tpu.dot_dimension_numbers<[1], [0], [0], [1], [0, 0, 1, 1], [], []>} : vector<16x4xf32>, vector<4x64xf32>, vector<16x64xf32> -> vector<16x64xf32>
    %c0_23 = arith.constant 0 : index
    %c0_24 = arith.constant 0 : index
    %25 = vector.load %arg10[%c0_23, %c0_24] : memref<1x64xf32, #tpu.memory_space<vmem>>, vector<1x64xf32>
    %26 = vector.broadcast %25 : vector<1x64xf32> to vector<16x64xf32>
    %27 = arith.addf %24, %26 : vector<16x64xf32>
    %cst_25 = arith.constant 0.000000e+00 : f32
    %28 = vector.broadcast %cst_25 : f32 to vector<16x64xf32>
    %29 = arith.maximumf %27, %28 : vector<16x64xf32>
    %c0_26 = arith.constant 0 : index
    %c0_27 = arith.constant 0 : index
    %30 = vector.load %arg11[%c0_26, %c0_27] : memref<64x128xf32, #tpu.memory_space<vmem>>, vector<64x128xf32>
    %cst_28 = arith.constant dense<0.000000e+00> : vector<16x128xf32>
    %31 = tpu.matmul %29, %30, %cst_28 {dimension_numbers = #tpu.dot_dimension_numbers<[1], [0], [0], [1], [0, 0, 1, 1], [], []>} : vector<16x64xf32>, vector<64x128xf32>, vector<16x128xf32> -> vector<16x128xf32>
    %c0_29 = arith.constant 0 : index
    %c0_30 = arith.constant 0 : index
    %32 = vector.load %arg12[%c0_29, %c0_30] : memref<1x128xf32, #tpu.memory_space<vmem>>, vector<1x128xf32>
    %33 = vector.broadcast %32 : vector<1x128xf32> to vector<16x128xf32>
    %34 = arith.addf %31, %33 : vector<16x128xf32>
    %cst_31 = arith.constant 0.000000e+00 : f32
    %35 = vector.broadcast %cst_31 : f32 to vector<16x128xf32>
    %36 = arith.maximumf %34, %35 : vector<16x128xf32>
    %c0_32 = arith.constant 0 : index
    %c0_33 = arith.constant 0 : index
    %37 = vector.load %arg13[%c0_32, %c0_33] : memref<128x64xf32, #tpu.memory_space<vmem>>, vector<128x64xf32>
    %cst_34 = arith.constant dense<0.000000e+00> : vector<16x64xf32>
    %38 = tpu.matmul %36, %37, %cst_34 {dimension_numbers = #tpu.dot_dimension_numbers<[1], [0], [0], [1], [0, 0, 1, 1], [], []>} : vector<16x128xf32>, vector<128x64xf32>, vector<16x64xf32> -> vector<16x64xf32>
    %c0_35 = arith.constant 0 : index
    %c0_36 = arith.constant 0 : index
    %39 = vector.load %arg14[%c0_35, %c0_36] : memref<1x64xf32, #tpu.memory_space<vmem>>, vector<1x64xf32>
    %40 = vector.broadcast %39 : vector<1x64xf32> to vector<16x64xf32>
    %41 = arith.addf %38, %40 : vector<16x64xf32>
    %cst_37 = arith.constant 0.000000e+00 : f32
    %42 = vector.broadcast %cst_37 : f32 to vector<16x64xf32>
    %43 = arith.maximumf %41, %42 : vector<16x64xf32>
    %c0_38 = arith.constant 0 : index
    %c0_39 = arith.constant 0 : index
    %44 = vector.load %arg15[%c0_38, %c0_39] : memref<64x64xf32, #tpu.memory_space<vmem>>, vector<64x64xf32>
    %cst_40 = arith.constant dense<0.000000e+00> : vector<16x64xf32>
    %45 = tpu.matmul %22, %44, %cst_40 {dimension_numbers = #tpu.dot_dimension_numbers<[1], [0], [0], [1], [0, 0, 1, 1], [], []>} : vector<16x64xf32>, vector<64x64xf32>, vector<16x64xf32> -> vector<16x64xf32>
    %c0_41 = arith.constant 0 : index
    %c0_42 = arith.constant 0 : index
    %46 = vector.load %arg16[%c0_41, %c0_42] : memref<64x64xf32, #tpu.memory_space<vmem>>, vector<64x64xf32>
    %cst_43 = arith.constant dense<0.000000e+00> : vector<16x64xf32>
    %47 = tpu.matmul %43, %46, %cst_43 {dimension_numbers = #tpu.dot_dimension_numbers<[1], [0], [0], [1], [0, 0, 1, 1], [], []>} : vector<16x64xf32>, vector<64x64xf32>, vector<16x64xf32> -> vector<16x64xf32>
    %48 = arith.addf %45, %47 : vector<16x64xf32>
    %c0_44 = arith.constant 0 : index
    %c0_45 = arith.constant 0 : index
    %49 = vector.load %arg17[%c0_44, %c0_45] : memref<1x64xf32, #tpu.memory_space<vmem>>, vector<1x64xf32>
    %50 = vector.broadcast %49 : vector<1x64xf32> to vector<16x64xf32>
    %51 = arith.addf %48, %50 : vector<16x64xf32>
    %c0_46 = arith.constant 0 : index
    %c0_47 = arith.constant 0 : index
    %52 = vector.load %arg18[%c0_46, %c0_47] : memref<64x8xf32, #tpu.memory_space<vmem>>, vector<64x8xf32>
    %cst_48 = arith.constant dense<0.000000e+00> : vector<16x8xf32>
    %53 = tpu.matmul %51, %52, %cst_48 {dimension_numbers = #tpu.dot_dimension_numbers<[1], [0], [0], [1], [0, 0, 1, 1], [], []>} : vector<16x64xf32>, vector<64x8xf32>, vector<16x8xf32> -> vector<16x8xf32>
    %c0_49 = arith.constant 0 : index
    %c0_50 = arith.constant 0 : index
    %54 = vector.load %arg19[%c0_49, %c0_50] : memref<1x8xf32, #tpu.memory_space<vmem>>, vector<1x8xf32>
    %55 = vector.broadcast %54 : vector<1x8xf32> to vector<16x8xf32>
    %56 = arith.addf %53, %55 : vector<16x8xf32>
    %57 = arith.addf %0, %56 : vector<16x8xf32>
    %c0_51 = arith.constant 0 : index
    %c0_52 = arith.constant 0 : index
    %58 = vector.load %arg20[%c0_51, %c0_52] : memref<16x8xf32, #tpu.memory_space<vmem>>, vector<16x8xf32>
    tpu.vector_store %arg20[%c0_51, %c0_52], %57 {strides = array<i32>} : memref<16x8xf32, #tpu.memory_space<vmem>>, vector<16x8xf32>,
    return
  }
  func.func @transform_0(%arg0: i32) -> (i32, i32) {
    %c0_i32 = arith.constant 0 : i32
    %c0_i32_0 = arith.constant 0 : i32
    return %arg0, %c0_i32 : i32, i32
  }
  func.func @transform_1(%arg0: i32) -> (i32, i32) {
    %c0_i32 = arith.constant 0 : i32
    %c0_i32_0 = arith.constant 0 : i32
    return %arg0, %c0_i32 : i32, i32
  }
  func.func @transform_2(%arg0: i32) -> (i32, i32) {
    %c0_i32 = arith.constant 0 : i32
    %c0_i32_0 = arith.constant 0 : i32
    %c0_i32_1 = arith.constant 0 : i32
    return %c0_i32, %c0_i32_0 : i32, i32
  }
  func.func @transform_3(%arg0: i32) -> (i32, i32) {
    %c0_i32 = arith.constant 0 : i32
    %c0_i32_0 = arith.constant 0 : i32
    %c0_i32_1 = arith.constant 0 : i32
    return %c0_i32, %c0_i32_0 : i32, i32
  }
  func.func @transform_4(%arg0: i32) -> (i32, i32) {
    %c0_i32 = arith.constant 0 : i32
    %c0_i32_0 = arith.constant 0 : i32
    %c0_i32_1 = arith.constant 0 : i32
    return %c0_i32, %c0_i32_0 : i32, i32
  }
  func.func @transform_5(%arg0: i32) -> (i32, i32) {
    %c0_i32 = arith.constant 0 : i32
    %c0_i32_0 = arith.constant 0 : i32
    %c0_i32_1 = arith.constant 0 : i32
    return %c0_i32, %c0_i32_0 : i32, i32
  }
  func.func @transform_6(%arg0: i32) -> (i32, i32) {
    %c0_i32 = arith.constant 0 : i32
    %c0_i32_0 = arith.constant 0 : i32
    %c0_i32_1 = arith.constant 0 : i32
    return %c0_i32, %c0_i32_0 : i32, i32
  }
  func.func @transform_7(%arg0: i32) -> (i32, i32) {
    %c0_i32 = arith.constant 0 : i32
    %c0_i32_0 = arith.constant 0 : i32
    %c0_i32_1 = arith.constant 0 : i32
    return %c0_i32, %c0_i32_0 : i32, i32
  }
  func.func @transform_8(%arg0: i32) -> (i32, i32) {
    %c0_i32 = arith.constant 0 : i32
    %c0_i32_0 = arith.constant 0 : i32
    %c0_i32_1 = arith.constant 0 : i32
    return %c0_i32, %c0_i32_0 : i32, i32
  }
  func.func @transform_9(%arg0: i32) -> (i32, i32) {
    %c0_i32 = arith.constant 0 : i32
    %c0_i32_0 = arith.constant 0 : i32
    %c0_i32_1 = arith.constant 0 : i32
    return %c0_i32, %c0_i32_0 : i32, i32
  }
  func.func @transform_10(%arg0: i32) -> (i32, i32) {
    %c0_i32 = arith.constant 0 : i32
    %c0_i32_0 = arith.constant 0 : i32
    %c0_i32_1 = arith.constant 0 : i32
    return %c0_i32, %c0_i32_0 : i32, i32
  }
  func.func @transform_11(%arg0: i32) -> (i32, i32) {
    %c0_i32 = arith.constant 0 : i32
    %c0_i32_0 = arith.constant 0 : i32
    %c0_i32_1 = arith.constant 0 : i32
    return %c0_i32, %c0_i32_0 : i32, i32
  }
  func.func @transform_12(%arg0: i32) -> (i32, i32) {
    %c0_i32 = arith.constant 0 : i32
    %c0_i32_0 = arith.constant 0 : i32
    %c0_i32_1 = arith.constant 0 : i32
    return %c0_i32, %c0_i32_0 : i32, i32
  }
  func.func @transform_13(%arg0: i32) -> (i32, i32) {
    %c0_i32 = arith.constant 0 : i32
    %c0_i32_0 = arith.constant 0 : i32
    %c0_i32_1 = arith.constant 0 : i32
    return %c0_i32, %c0_i32_0 : i32, i32
  }
  func.func @transform_14(%arg0: i32) -> (i32, i32) {
    %c0_i32 = arith.constant 0 : i32
    %c0_i32_0 = arith.constant 0 : i32
    %c0_i32_1 = arith.constant 0 : i32
    return %c0_i32, %c0_i32_0 : i32, i32
  }
  func.func @transform_15(%arg0: i32) -> (i32, i32) {
    %c0_i32 = arith.constant 0 : i32
    %c0_i32_0 = arith.constant 0 : i32
    %c0_i32_1 = arith.constant 0 : i32
    return %c0_i32, %c0_i32_0 : i32, i32
  }
  func.func @transform_16(%arg0: i32) -> (i32, i32) {
    %c0_i32 = arith.constant 0 : i32
    %c0_i32_0 = arith.constant 0 : i32
    %c0_i32_1 = arith.constant 0 : i32
    return %c0_i32, %c0_i32_0 : i32, i32
  }
  func.func @transform_17(%arg0: i32) -> (i32, i32) {
    %c0_i32 = arith.constant 0 : i32
    %c0_i32_0 = arith.constant 0 : i32
    %c0_i32_1 = arith.constant 0 : i32
    return %c0_i32, %c0_i32_0 : i32, i32
  }
  func.func @transform_18(%arg0: i32) -> (i32, i32) {
    %c0_i32 = arith.constant 0 : i32
    %c0_i32_0 = arith.constant 0 : i32
    %c0_i32_1 = arith.constant 0 : i32
    return %c0_i32, %c0_i32_0 : i32, i32
  }
  func.func @transform_19(%arg0: i32) -> (i32, i32) {
    %c0_i32 = arith.constant 0 : i32
    %c0_i32_0 = arith.constant 0 : i32
    return %arg0, %c0_i32 : i32, i32
  }
}

</mosaic_0001>

<bundles_post_ra>
// kernel: tpu_custom_call.1
= control target key start
LH: loop header
LB: loop body
LE: loop exit
PB: predicated region body
PF: predicated region fallthrough
CT: control target
= control target key end

     0   :  { %vm74_vm0 = vcmask 64512   ;;  %vm372_vm1 = vcmask 1043456   ;;  %vm173_vm2 = vcmask 523264   ;;  %vm365_vm3 = vcmask 31744   ;;  %s1769_s2 = inlined_call_operand.vmem [shape: f32[8,64], index: 2, kind: input, shape index: {}]   ;;  %s1770_s0 = inlined_call_operand.vmem [shape: f32[16,8], index: 0, kind: input, shape index: {}]   ;;  %s1771_s4 = inlined_call_operand.vmem [shape: f32[64,128], index: 4, kind: input, shape index: {}]   ;;  %s1772_s8 = inlined_call_operand.vmem [shape: f32[4,64], index: 8, kind: input, shape index: {}]   ;;  %s1773_s6 = inlined_call_operand.vmem [shape: f32[128,64], index: 6, kind: input, shape index: {}]   ;;  %s1774_s3 = inlined_call_operand.vmem [shape: f32[1,64], index: 3, kind: input, shape index: {}]   ;;  %s1775_s10 = inlined_call_operand.vmem [shape: f32[64,128], index: 10, kind: input, shape index: {}]   ;;  %s1776_s1 = inlined_call_operand.vmem [shape: f32[16,4], index: 1, kind: input, shape index: {}]   ;;  %s1777_s12 = inlined_call_operand.vmem [shape: f32[128,64], index: 12, kind: input, shape index: {}]   ;;  %s1778_s5 = inlined_call_operand.vmem [shape: f32[1,128], index: 5, kind: input, shape index: {}]   ;;  %s1779_s9 = inlined_call_operand.vmem [shape: f32[1,64], index: 9, kind: input, shape index: {}]   ;;  %s1780_s15 = inlined_call_operand.vmem [shape: f32[64,64], index: 15, kind: input, shape index: {}]   ;;  %s1781_s11 = inlined_call_operand.vmem [shape: f32[1,128], index: 11, kind: input, shape index: {}]   ;;  %s1782_s14 = inlined_call_operand.vmem [shape: f32[64,64], index: 14, kind: input, shape index: {}]   ;;  %s1783_s17 = inlined_call_operand.vmem [shape: f32[64,8], index: 17, kind: input, shape index: {}]   ;;  %s1784_s13 = inlined_call_operand.vmem [shape: f32[1,64], index: 13, kind: input, shape index: {}]   ;;  %s1785_s7 = inlined_call_operand.vmem [shape: f32[1,64], index: 7, kind: input, shape index: {}]   ;;  %s1786_s16 = inlined_call_operand.vmem [shape: f32[1,64], index: 16, kind: input, shape index: {}]   ;;  %s1787_s18 = inlined_call_operand.vmem [shape: f32[1,8], index: 18, kind: input, shape index: {}]   ;;  %s1788_s19 = inlined_call_operand.vmem [shape: f32[16,8], index: 19, kind: output, shape index: {}]  }
   0x1   :  { %1791 = sst [smem:[#allocation2_spill]] %s1769_s2  ;;  %v257_v16 = vld [vmem:[%s1773_s6] sm:$0xff]  ;;  %v258_v17 = vld [vmem:[%s1773_s6 + $0x8] sm:$0xff]  ;;  %v259_v18 = vld [vmem:[%s1773_s6 + $0x10] sm:$0xff] }
   0x2   :  { %1792 = sst [smem:[#allocation3_spill]] %s1770_s0  ;;  %s1795_s20 = sld [smem:[#allocation2_spill]]  ;;  %v1248_v19 = vpack.c.bf16 %v258_v17, %v257_v16  ;;  %v260_v20 = vld [vmem:[%s1773_s6 + $0x18] sm:$0xff]  ;;  %v261_v22 = vld [vmem:[%s1773_s6 + $0x20] sm:$0xff]  ;;  %v262_v23 = vld [vmem:[%s1773_s6 + $0x28] sm:$0xff] }
   0x3   :  { %1793 = sst [smem:[#allocation4_spill]] %s1771_s4  ;;  %s1796_s22 = sld [smem:[#allocation3_spill]]  ;;  %v1252_v21 = vpack.c.bf16 %v260_v20, %v259_v18  ;;  %v1256_v24 = vpack.c.bf16 %v262_v23, %v261_v22  ;;  %v263_v25 = vld [vmem:[%s1773_s6 + $0x30] sm:$0xff]  ;;  %v264_v26 = vld [vmem:[%s1773_s6 + $0x38] sm:$0xff]  ;;  %v265_v28 = vld [vmem:[%s1773_s6 + $0x40] sm:$0xff] }
   0x4   :  { %1794 = sst [smem:[#allocation5_spill]] %s1772_s8  ;;  %s1797_s8 = sld [smem:[#allocation4_spill]]  ;;  %1249 = vmatprep.subr.bf16.mxu0 %v1248_v19  ;;  %v1260_v27 = vpack.c.bf16 %v264_v26, %v263_v25  ;;  %v266_v29 = vld [vmem:[%s1773_s6 + $0x48] sm:$0xff]  ;;  %v267_v31 = vld [vmem:[%s1773_s6 + $0x50] sm:$0xff]  ;;  %v268_v32 = vld [vmem:[%s1773_s6 + $0x58] sm:$0xff] }
   0x5   :  { %s1798_s28 = sld [smem:[#allocation5_spill]]  ;;  %1251 = vmatpush3.bf16.msra.mxu0 %v1248_v19  ;;  %v1264_v30 = vpack.c.bf16 %v266_v29, %v265_v28  ;;  %v1268_v33 = vpack.c.bf16 %v268_v32, %v267_v31  ;;  %v269_v34 = vld [vmem:[%s1773_s6 + $0x60] sm:$0xff]  ;;  %v270_v35 = vld [vmem:[%s1773_s6 + $0x68] sm:$0xff]  ;;  %v455_v48 = vld [vmem:[%s1775_s10 + $0x10] sm:$0xff] }
   0x6   :  { %1253 = vmatprep.subr.bf16.mxu0 %v1252_v21  ;;  %v1272_v36 = vpack.c.bf16 %v270_v35, %v269_v34  ;;  %v942_v37 = vld [vmem:[%s1774_s3] ss:$0 sm:$0xff]  ;;  %v454_v43 = vld [vmem:[%s1775_s10 + $0x8] sm:$0xff]  ;;  %v456_v49 = vld [vmem:[%s1775_s10 + $0x18] sm:$0xff] }
   0x7   :  { %v453_v42 = vld [vmem:[%s1775_s10] sm:$0xff]  ;;  %v65_v50 = vld [vmem:[%s1776_s1 + $0x8] sm:$0xff]  ;;  %v1284_v51 = vpack.c.bf16 %v456_v49, %v455_v48  ;;  %v271_v52 = vld [vmem:[%s1773_s6 + $0x70] sm:$0xff] }
   0x8   :  { %v66_v0 = vld [vmem:[%s1795_s20] sm:$0xff]  ;;  %v1280_v47 = vpack.c.bf16 %v454_v43, %v453_v42  ;;  %v272_v53 = vld [vmem:[%s1773_s6 + $0x78] sm:$0xff]  ;;  %v458_v56 = vld [vmem:[%s1775_s10 + $0x28] sm:$0xff] }
   0x9   :  { %v1484_v1 = vld [vmem:[%s1796_s22] sm:$0xff]  ;;  %v1489_v2 = vld [vmem:[%s1796_s22 + $0x8] sm:$0xff]  ;;  %1057 = vmatprep.subr.mxu1 %v66_v0  ;;  %1255 = vmatpush3.bf16.msra.mxu0 %v1252_v21  ;;  %v1276_v54 = vpack.c.bf16 %v272_v53, %v271_v52  ;;  %v459_v58 = vld [vmem:[%s1775_s10 + $0x30] sm:$0xff] }
   0xa   :  { %1059 = vmatprep.mubr.msk.f32.mxu1 %vm74_vm0, %v1484_v1  ;;  %v158_v3 = vld [vmem:[%s1797_s8] sm:$0xff]  ;;  %v159_v4 = vld [vmem:[%s1797_s8 + $0x8] sm:$0xff]  ;;  %v160_v5 = vld [vmem:[%s1797_s8 + $0x10] sm:$0xff]  ;;  %1058 = vmatpush3.msra.mxu1 %v66_v0 }
   0xb   :  { %v1232_v6 = vpack.c.bf16 %v159_v4, %v158_v3  ;;  %v161_v7 = vld [vmem:[%s1797_s8 + $0x18] sm:$0xff]  ;;  %1060 = vmatmul.mubr.msk.f32.vlgmr.msra.gmra.mrb[0].mxu1 %vm74_vm0, %v1489_v2  ;;  %v162_v9 = vld [vmem:[%s1797_s8 + $0x20] sm:$0xff]  ;;  %v163_v10 = vld [vmem:[%s1797_s8 + $0x28] sm:$0xff]  ;;  %1257 = vmatprep.subr.bf16.mxu0 %v1256_v24 }
   0xc   :  { %v1236_v8 = vpack.c.bf16 %v161_v7, %v160_v5  ;;  %v1240_v11 = vpack.c.bf16 %v163_v10, %v162_v9  ;;  %v164_v12 = vld [vmem:[%s1797_s8 + $0x30] sm:$0xff]  ;;  %v165_v13 = vld [vmem:[%s1797_s8 + $0x38] sm:$0xff]  ;;  %v357_v15 = vld [vmem:[%s1798_s28] sm:$0xf] }
   0xd   :  { %1233 = vmatprep.subr.bf16.mxu1 %v1232_v6  ;;  %v1244_v14 = vpack.c.bf16 %v165_v13, %v164_v12  ;;  %1259 = vmatpush3.bf16.msra.mxu0 %v1256_v24  ;;  %v64_v46 = vld [vmem:[%s1776_s1] sm:$0xff]  ;;  %v460_v59 = vld [vmem:[%s1775_s10 + $0x38] sm:$0xff]  ;;  %v552_v62 = vld [vmem:[%s1777_s12 + $0x8] sm:$0xff] }
   0xe   :  { %1235 = vmatpush3.bf16.msra.mxu1 %v1232_v6  ;;  %1261 = vmatprep.subr.bf16.mxu0 %v1260_v27  ;;  %v457_v55 = vld [vmem:[%s1775_s10 + $0x20] sm:$0xff]  ;;  %v1292_v60 = vpack.c.bf16 %v460_v59, %v459_v58  ;;  %v554_v9 = vld [vmem:[%s1777_s12 + $0x18] sm:$0xff]  ;;  %v556_v18 = vld [vmem:[%s1777_s12 + $0x28] sm:$0xff] }
   0xf   :  { %1237 = vmatprep.subr.bf16.mxu1 %v1236_v8  ;;  %v1288_v57 = vpack.c.bf16 %v458_v56, %v457_v55  ;;  %v551_v61 = vld [vmem:[%s1777_s12] sm:$0xff]  ;;  %v557_v22 = vld [vmem:[%s1777_s12 + $0x30] sm:$0xff]  ;;  %v558_v23 = vld [vmem:[%s1777_s12 + $0x38] sm:$0xff] }
  0x10   :  { %v1296_v63 = vpack.c.bf16 %v552_v62, %v551_v61  ;;  %v945_v0 = vld [vmem:[%s1778_s5] ss:$0 sm:$0xff]  ;;  %v1308_v24 = vpack.c.bf16 %v558_v23, %v557_v22  ;;  %v560_v26 = vld [vmem:[%s1777_s12 + $0x48] sm:$0xff]  ;;  %v561_v28 = vld [vmem:[%s1777_s12 + $0x50] sm:$0xff] }
  0x11   :  { %1263 = vmatpush3.bf16.msra.mxu0 %v1260_v27  ;;  %v949_v6 = vld [vmem:[%s1779_s9] ss:$0 sm:$0xff]  ;;  %v562_v29 = vld [vmem:[%s1777_s12 + $0x58] sm:$0xff]  ;;  %v564_v32 = vld [vmem:[%s1777_s12 + $0x68] sm:$0xff] }
  0x12   :  { %1239 = vmatpush3.bf16.msra.mxu1 %v1236_v8  ;;  %1265 = vmatprep.subr.bf16.mxu0 %v1264_v30  ;;  %v553_v8 = vld [vmem:[%s1777_s12 + $0x10] sm:$0xff]  ;;  %v555_v17 = vld [vmem:[%s1777_s12 + $0x20] sm:$0xff]  ;;  %v566_v35 = vld [vmem:[%s1777_s12 + $0x78] sm:$0xff] }
  0x13   :  { %1241 = vmatprep.subr.bf16.mxu1 %v1240_v11  ;;  %v1304_v21 = vpack.c.bf16 %v556_v18, %v555_v17  ;;  %v559_v25 = vld [vmem:[%s1777_s12 + $0x40] sm:$0xff]  ;;  %v565_v34 = vld [vmem:[%s1777_s12 + $0x70] sm:$0xff]  ;;  %v666_v56 = vld [vmem:[%s1780_s15 + $0x38] sm:$0xff] }
  0x14   :  { %v1312_v27 = vpack.c.bf16 %v560_v26, %v559_v25  ;;  %v563_v31 = vld [vmem:[%s1777_s12 + $0x60] sm:$0xff]  ;;  %v665_v55 = vld [vmem:[%s1780_s15 + $0x30] sm:$0xff]  ;;  %v652_v59 = vld [vmem:[%s1782_s14 + $0x8] sm:$0xff] }
  0x15   :  { %1267 = vmatpush3.bf16.msra.mxu0 %v1264_v30  ;;  %v1316_v30 = vpack.c.bf16 %v562_v29, %v561_v28  ;;  %v663_v43 = vld [vmem:[%s1780_s15 + $0x20] sm:$0xff]  ;;  %v839_v62 = vld [vmem:[%s1783_s17 + $0x8] sm:$0xff]  ;;  %v658_v25 = vld [vmem:[%s1782_s14 + $0x38] sm:$0xff] }
  0x16   :  { %1243 = vmatpush3.bf16.msra.mxu1 %v1240_v11  ;;  %1269 = vmatprep.subr.bf16.mxu0 %v1268_v33  ;;  %v953_v48 = vld [vmem:[%s1781_s11] ss:$0 sm:$0xff]  ;;  %v656_v22 = vld [vmem:[%s1782_s14 + $0x28] sm:$0xff]  ;;  %v844_v29 = vld [vmem:[%s1783_s17 + $0x30] sm:$0xff] }
  0x17   :  { %1245 = vmatprep.subr.bf16.mxu1 %v1244_v14  ;;  %v651_v58 = vld [vmem:[%s1782_s14] sm:$0xff] }
  0x18   :  { %v838_v61 = vld [vmem:[%s1783_s17] sm:$0xff] }
  0x19   :  { %1271 = vmatpush3.bf16.msra.mxu0 %v1268_v33  ;;  %v1320_v33 = vpack.c.bf16 %v564_v32, %v563_v31  ;;  %v961_v32 = vld [vmem:[%s1786_s16] ss:$0 sm:$0xff] }
  0x1a   :  { %1247 = vmatpush3.bf16.msra.mxu1 %v1244_v14  ;;  %1273 = vmatprep.subr.bf16.mxu0 %v1272_v36 }
  0x1b   :  { %1116 = vmatprep.subr.msk.mxu1 %vm372_vm1, %v357_v15 }
  0x1d   :  { %1275 = vmatpush3.bf16.msra.mxu0 %v1272_v36  ;;  %v1324_v36 = vpack.c.bf16 %v566_v35, %v565_v34 }
  0x1e   :  { %1277 = vmatprep.subr.bf16.mxu0 %v1276_v54 }
  0x21   :  { %1279 = vmatpush3.bf16.msra.mxu0 %v1276_v54 }
  0x22   :  { %1297 = vmatprep.subr.bf16.mxu0 %v1296_v63 }
  0xde   :  { %v1061_v38 = vpop.f32.mrb[0].mxu1 }
  0xdf   :  { %v153_v39 = vadd.f32 %v1061_v38, %v942_v37  ;;  %v147_v40 = vpop.f32.mrb[1].mxu1  ;;  %v660_v38 = vld [vmem:[%s1780_s15 + $0x8] sm:$0xff] }
  0xe0   :  { %v148_v41 = vadd.f32 %v942_v37, %v147_v40  ;;  %v659_v37 = vld [vmem:[%s1780_s15] sm:$0xff] }
  0xe1   :  { %v157_v45 = vmax.f32 %v153_v39, 0.0  ;;  %v661_v39 = vld [vmem:[%s1780_s15 + $0x10] sm:$0xff]  ;;  %v1328_v40 = vpack.c.bf16 %v660_v38, %v659_v37  ;;  %v962_v37 = vld [vmem:[%s1787_s18] ss:$0 sm:$0xff] }
  0xe2   :  { %v156_v44 = vmax.f32 %v148_v41, 0.0  ;;  %v662_v41 = vld [vmem:[%s1780_s15 + $0x18] sm:$0xff] }
  0xe3   :  { %v1332_v42 = vpack.c.bf16 %v662_v41, %v661_v39 }
  0xe4   :  { %1078 = vmatprep.mubr.msk.f32.mxu1 %vm173_vm2, %v156_v44  ;;  %v664_v44 = vld [vmem:[%s1780_s15 + $0x28] sm:$0xff] }
  0xe5   :  { %1079 = vmatmul.mubr.msk.f32.vlgmr.msra.gmra.mrb[2].mxu1 %vm173_vm2, %v157_v45  ;;  %v1336_v45 = vpack.c.bf16 %v664_v44, %v663_v43 }
  0xe6   :  { %1117 = vmatpush3.msk.msra.mxu1 %vm372_vm1, %v357_v15  ;;  %1118 = vmatprep.mubr.msk.f32.mxu1 %vm365_vm3, %v64_v46  ;;  %v1300_v15 = vpack.c.bf16 %v554_v9, %v553_v8  ;;  %v956_v8 = vld [vmem:[%s1784_s13] ss:$0 sm:$0xff] }
  0xe7   :  { %1281 = vmatprep.subr.bf16.mxu1 %v1280_v47  ;;  %v948_v9 = vld [vmem:[%s1785_s7] ss:$0 sm:$0xff] }
  0xe9   :  { %1119 = vmatmul.mubr.msk.f32.vlgmr.msra.gmra.mrb[4].mxu1 %vm365_vm3, %v65_v50 }
  0xea   :  { %1283 = vmatpush3.bf16.msra.mxu1 %v1280_v47 }
  0xeb   :  { %1285 = vmatprep.subr.bf16.mxu1 %v1284_v51 }
  0xee   :  { %1287 = vmatpush3.bf16.msra.mxu1 %v1284_v51 }
  0xef   :  { %1289 = vmatprep.subr.bf16.mxu1 %v1288_v57 }
  0xf2   :  { %1291 = vmatpush3.bf16.msra.mxu1 %v1288_v57  ;;  %v1340_v57 = vpack.c.bf16 %v666_v56, %v665_v55 }
  0xf3   :  { %1293 = vmatprep.subr.bf16.mxu1 %v1292_v60 }
  0xf6   :  { %1295 = vmatpush3.bf16.msra.mxu1 %v1292_v60  ;;  %v1344_v60 = vpack.c.bf16 %v652_v59, %v651_v58 }
  0xf7   :  { %1329 = vmatprep.subr.bf16.mxu1 %v1328_v40 }
 0x1b8   :  { %v1080_v3 = vpop.f32.mrb[2].mxu1 }
 0x1b9   :  { %v252_v4 = vadd.f32 %v1080_v3, %v945_v0  ;;  %v246_v5 = vpop.f32.mrb[3].mxu1  ;;  %v841_v3 = vld [vmem:[%s1783_s17 + $0x18] sm:$0xff] }
 0x1ba   :  { %v247_v7 = vadd.f32 %v945_v0, %v246_v5  ;;  %v1360_v0 = vpack.c.bf16 %v839_v62, %v838_v61  ;;  %v842_v5 = vld [vmem:[%s1783_s17 + $0x20] sm:$0xff] }
 0x1bb   :  { %v256_v12 = vmax.f32 %v252_v4, 0.0 }
 0x1bc   :  { %v1120_v10 = vpop.f32.mrb[4].mxu1  ;;  %v255_v11 = vmax.f32 %v247_v7, 0.0 }
 0x1bd   :  { %v448_v13 = vadd.f32 %v1120_v10, %v949_v6  ;;  %v442_v14 = vpop.f32.mrb[5].mxu1 }
 0x1be   :  { %v443_v16 = vadd.f32 %v949_v6, %v442_v14  ;;  %1113 = vmatprep.mubr.f32.mxu0 %v255_v11  ;;  %v843_v6 = vld [vmem:[%s1783_s17 + $0x28] sm:$0xff] }
 0x1bf   :  { %1114 = vmatmul.mubr.f32.vlgmr.msra.gmra.mrb[0].mxu0 %v256_v12  ;;  %v452_v20 = vmax.f32 %v448_v13, 0.0  ;;  %v1368_v7 = vpack.c.bf16 %v843_v6, %v842_v5 }
 0x1c0   :  { %v451_v19 = vmax.f32 %v443_v16, 0.0  ;;  %1299 = vmatpush3.bf16.msra.mxu0 %v1296_v63  ;;  %v840_v63 = vld [vmem:[%s1783_s17 + $0x10] sm:$0xff]  ;;  %v654_v16 = vld [vmem:[%s1782_s14 + $0x18] sm:$0xff] }
 0x1c1   :  { %1301 = vmatprep.subr.bf16.mxu0 %v1300_v15  ;;  %v1364_v4 = vpack.c.bf16 %v841_v3, %v840_v63 }
 0x1c2   :  { %1137 = vmatprep.mubr.msk.f32.mxu1 %vm173_vm2, %v451_v19 }
 0x1c3   :  { %1138 = vmatmul.mubr.msk.f32.vlgmr.msra.gmra.mrb[6].mxu1 %vm173_vm2, %v452_v20 }
 0x1c4   :  { %1303 = vmatpush3.bf16.msra.mxu0 %v1300_v15  ;;  %1331 = vmatpush3.bf16.msra.mxu1 %v1328_v40  ;;  %v653_v15 = vld [vmem:[%s1782_s14 + $0x10] sm:$0xff] }
 0x1c5   :  { %1305 = vmatprep.subr.bf16.mxu0 %v1304_v21  ;;  %1333 = vmatprep.subr.bf16.mxu1 %v1332_v42  ;;  %v1348_v19 = vpack.c.bf16 %v654_v16, %v653_v15 }
 0x1c8   :  { %1307 = vmatpush3.bf16.msra.mxu0 %v1304_v21  ;;  %1335 = vmatpush3.bf16.msra.mxu1 %v1332_v42  ;;  %v655_v21 = vld [vmem:[%s1782_s14 + $0x20] sm:$0xff] }
 0x1c9   :  { %1309 = vmatprep.subr.bf16.mxu0 %v1308_v24  ;;  %1337 = vmatprep.subr.bf16.mxu1 %v1336_v45  ;;  %v1352_v23 = vpack.c.bf16 %v656_v22, %v655_v21 }
 0x1cc   :  { %1311 = vmatpush3.bf16.msra.mxu0 %v1308_v24  ;;  %1339 = vmatpush3.bf16.msra.mxu1 %v1336_v45  ;;  %v657_v24 = vld [vmem:[%s1782_s14 + $0x30] sm:$0xff] }
 0x1cd   :  { %1313 = vmatprep.subr.bf16.mxu0 %v1312_v27  ;;  %1341 = vmatprep.subr.bf16.mxu1 %v1340_v57  ;;  %v1356_v26 = vpack.c.bf16 %v658_v25, %v657_v24 }
 0x1d0   :  { %1315 = vmatpush3.bf16.msra.mxu0 %v1312_v27  ;;  %1343 = vmatpush3.bf16.msra.mxu1 %v1340_v57 }
 0x1d1   :  { %1317 = vmatprep.subr.bf16.mxu0 %v1316_v30  ;;  %1345 = vmatprep.subr.bf16.mxu1 %v1344_v60 }
 0x1d4   :  { %1319 = vmatpush3.bf16.msra.mxu0 %v1316_v30  ;;  %v845_v30 = vld [vmem:[%s1783_s17 + $0x38] sm:$0xff] }
 0x1d5   :  { %1321 = vmatprep.subr.bf16.mxu0 %v1320_v33  ;;  %v1372_v31 = vpack.c.bf16 %v845_v30, %v844_v29 }
 0x1d8   :  { %1323 = vmatpush3.bf16.msra.mxu0 %v1320_v33 }
 0x1d9   :  { %1325 = vmatprep.subr.bf16.mxu0 %v1324_v36 }
 0x1dc   :  { %1327 = vmatpush3.bf16.msra.mxu0 %v1324_v36 }
 0x1dd   :  { %1361 = vmatprep.subr.bf16.mxu0 %v1360_v0 }
 0x292   :  { %v1681_v46 = vpop.f32.mrb[0].mxu0 }
 0x293   :  { %v346_v47 = vpop.f32.mrb[1].mxu0  ;;  %v352_v27 = vadd.f32 %v1681_v46, %v948_v9 }
 0x294   :  { %v347_v13 = vadd.f32 %v948_v9, %v346_v47 }
 0x295   :  { %v356_v28 = vmax.f32 %v352_v27, 0.0 }
 0x296   :  { %v1139_v49 = vpop.f32.mrb[6].mxu1  ;;  %v355_v20 = vmax.f32 %v347_v13, 0.0 }
 0x297   :  { %v546_v50 = vadd.f32 %v1139_v49, %v953_v48  ;;  %v540_v51 = vpop.f32.mrb[7].mxu1 }
 0x298   :  { %v541_v52 = vadd.f32 %v953_v48, %v540_v51 }
 0x299   :  { %v550_v54 = vmax.f32 %v546_v50, 0.0 }
 0x29a   :  { %v549_v53 = vmax.f32 %v541_v52, 0.0 }
 0x29c   :  { %1172 = vmatprep.mubr.f32.mxu0 %v549_v53 }
 0x29d   :  { %1173 = vmatmul.mubr.f32.vlgmr.msra.gmra.mrb[2].mxu0 %v550_v54 }
 0x29e   :  { %1363 = vmatpush3.bf16.msra.mxu0 %v1360_v0 }
 0x29f   :  { %1365 = vmatprep.subr.bf16.mxu0 %v1364_v4 }
 0x2a2   :  { %1367 = vmatpush3.bf16.msra.mxu0 %v1364_v4 }
 0x2a3   :  { %1369 = vmatprep.subr.bf16.mxu0 %v1368_v7 }
 0x2a6   :  { %1371 = vmatpush3.bf16.msra.mxu0 %v1368_v7 }
 0x2a7   :  { %1373 = vmatprep.subr.bf16.mxu0 %v1372_v31 }
 0x2aa   :  { %1375 = vmatpush3.bf16.msra.mxu0 %v1372_v31 }
 0x370   :  { %v1174_v10 = vpop.f32.mrb[2].mxu0 }
 0x371   :  { %v646_v11 = vadd.f32 %v1174_v10, %v956_v8  ;;  %v640_v12 = vpop.f32.mrb[3].mxu0 }
 0x372   :  { %v641_v14 = vadd.f32 %v956_v8, %v640_v12 }
 0x373   :  { %v650_v18 = vmax.f32 %v646_v11, 0.0 }
 0x374   :  { %v649_v17 = vmax.f32 %v641_v14, 0.0 }
 0x376   :  { %1191 = vmatprep.mubr.msk.f32.mxu1 %vm173_vm2, %v649_v17 }
 0x377   :  { %1192 = vmatmul.mubr.msk.f32.vlgmr.msra.gmra.mrb[8].mxu1 %vm173_vm2, %v650_v18 }
 0x378   :  { %1347 = vmatpush3.bf16.msra.mxu1 %v1344_v60  ;;  %1210 = vmatprep.mubr.msk.f32.mxu1 %vm173_vm2, %v355_v20 }
 0x379   :  { %1349 = vmatprep.subr.bf16.mxu1 %v1348_v19 }
 0x37c   :  { %1351 = vmatpush3.bf16.msra.mxu1 %v1348_v19 }
 0x37d   :  { %1353 = vmatprep.subr.bf16.mxu1 %v1352_v23 }
 0x380   :  { %1355 = vmatpush3.bf16.msra.mxu1 %v1352_v23 }
 0x381   :  { %1357 = vmatprep.subr.bf16.mxu1 %v1356_v26 }
 0x384   :  { %1359 = vmatpush3.bf16.msra.mxu1 %v1356_v26 }
 0x387   :  { %1211 = vmatmul.mubr.msk.f32.vlgmr.msra.gmra.mrb[8].mxu1 %vm173_vm2, %v356_v28 }
 0x45a   :  { %v1212_v33 = vpop.f32.mrb[8].mxu1 }
 0x45b   :  { %v820_v34 = vpop.f32.mrb[9].mxu1  ;;  %v837_v36 = vadd.f32 %v1212_v33, %v961_v32 }
 0x45c   :  { %v836_v35 = vadd.f32 %v961_v32, %v820_v34 }
 0x45e   :  { %1229 = vmatprep.mubr.msk.f32.mxu0 %vm173_vm2, %v836_v35 }
 0x45f   :  { %1230 = vmatmul.mubr.msk.f32.vlgmr.msra.gmra.mrb[4].mxu0 %vm173_vm2, %v837_v36 }
 0x532   :  { %v1231_v38 = vpop.f32.mrb[4].mxu0 }
 0x533   :  { %v931_v39 = vadd.f32 %v1231_v38, %v962_v37  ;;  %v925_v40 = vpop.f32.mrb[5].mxu0 }
 0x534   :  { %v926_v41 = vadd.f32 %v962_v37, %v925_v40 }
 0x535   :  { %v935_v42 = vadd.f32 %v931_v39, %v1489_v2 }
 0x536   :  { %v934_v43 = vadd.f32 %v926_v41, %v1484_v1 }
 0x537   :  { %937 = vst.msk [vmem:[%s1788_s19 + $0x8] sm:$0xff] %vm74_vm0, %v935_v42 }
 0x538   :  { %936 = vst.msk [vmem:[%s1788_s19] sm:$0xff] %vm74_vm0, %v934_v43 }

</bundles_post_ra>
